<compile_context>
chip_gen: v7x
topology: tpu7x:2x2x1
jax: 0.10.0
libtpu: 0.0.40
codegen_flags: <defaults>
</compile_context>

<pallas_src>
import functools

import jax
import jax.numpy as jnp
from jax import lax
from jax.experimental import pallas as pl
from jax.experimental.pallas import tpu as pltpu


def _affinity_loss_kernel(anchor_ref, aff_ref, out_ref, acc_ref, *, tail_rows):
    """One (crop, row_tile) step: accumulate this crop's sum(1 - cos) over the tile."""
    i = pl.program_id(1)
    last_i = pl.num_programs(1) - 1

    @pl.when(i == 0)
    def _init():
        acc_ref[...] = jnp.zeros_like(acc_ref)

    # anchor tile of crop c, aff tile of crop (1 - c) -- crossing done by index_map.
    x = anchor_ref[...].astype(jnp.float32)   # [tile_rows, D]
    y = aff_ref[...].astype(jnp.float32)      # [tile_rows, D]

    # Lane-axis (feature-dim) reductions, kept as [tile_rows, 1] columns.
    w12 = jnp.sum(x * y, axis=-1, keepdims=True)
    w1 = jnp.sum(x * x, axis=-1, keepdims=True)
    w2 = jnp.sum(y * y, axis=-1, keepdims=True)

    # Modern PyTorch cosine_similarity eps semantics:
    #   cos = w12 / (max(||x||, eps) * max(||y||, eps))
    #       = w12 * rsqrt(max(w1, eps^2) * max(w2, eps^2))
    eps2 = jnp.float32(1e-16)  # (1e-8)^2
    cos = w12 * lax.rsqrt(jnp.maximum(w1, eps2) * jnp.maximum(w2, eps2))
    one_minus_cos = jnp.float32(1.0) - cos    # [tile_rows, 1]

    # Masked ragged tail (only emitted when N % tile_rows != 0). jnp.where is a hardware
    # select, so garbage in the out-of-bounds pad region never propagates.
    if tail_rows:
        row_ids = lax.broadcasted_iota(jnp.int32, one_minus_cos.shape, 0)
        valid = jnp.logical_or(i != last_i, row_ids < tail_rows)
        one_minus_cos = jnp.where(valid, one_minus_cos, jnp.float32(0.0))

    # Single f32 partial per step into a tiny (1,1) accumulator.
    acc_ref[...] += jnp.sum(one_minus_cos, keepdims=True)

    @pl.when(i == last_i)
    def _finalize():
        out_ref[...] = acc_ref[...]   # per-crop sum of (1 - cos); mean/scale done in JAX


def _sublane_multiple(dtype):
    # Native sublane packing: 8 rows for 4-byte, 16 for 2-byte, 32 for 1-byte dtypes.
    itemsize = jnp.dtype(dtype).itemsize
    return max(8, 32 // max(1, itemsize))


def _vmem_budget():
    """Generation-aware (target_tile_bytes, vmem_limit_bytes)."""
    try:
        vmem = int(getattr(pltpu.get_tpu_info(), "vmem_capacity_bytes", 0))
    except Exception:
        vmem = 0
    if vmem >= 100 * 1024 * 1024:
        # v5e / v6e: 128 MiB physical VMEM -> bigger tiles, fewer/longer DMAs.
        return 8 * 1024 * 1024, 64 * 1024 * 1024
    if vmem > 0:
        # v7x: only 64 MiB physical per TensorCore -> keep 2 inputs x 2 buffers well under.
        return 4 * 1024 * 1024, 40 * 1024 * 1024
    # Unknown generation: conservative defaults.
    return 4 * 1024 * 1024, 32 * 1024 * 1024


def _pick_tile_rows(n, d, dtype, target_tile_bytes):
    """Largest byte-bounded row tile: multiple of the sublane packing, no bigger than needed
    to cover one crop, sized so 2 inputs x 2 pipeline buffers stay inside scoped VMEM."""
    mult = _sublane_multiple(dtype)
    bytes_per_row = max(1, d * jnp.dtype(dtype).itemsize)
    max_rows = max(mult, int(target_tile_bytes // bytes_per_row))
    max_rows = min(max_rows, 8192)                      # keep per-step vreg pressure sane
    cover = ((n + mult - 1) // mult) * mult             # enough rows to cover the crop once
    cap = min(max_rows, cover)
    return max(mult, (cap // mult) * mult)


def affinity_similarity_loss(anchor, aff_nn):
    """anchor, aff_nn: [2*N, D] (f32 or bf16). Returns scalar f32 loss."""
    assert anchor.shape == aff_nn.shape, "anchor/aff_nn shapes must match"
    assert anchor.dtype == aff_nn.dtype, "anchor/aff_nn dtypes must match"
    total_rows, d = anchor.shape
    assert total_rows % 2 == 0, "batch must be divisible by 2 (ncrops=2)"
    n = total_rows // 2

    # [2N, D] -> [2, N, D]: free metadata reshape; tiles never straddle the crop boundary.
    anchor3 = anchor.reshape(2, n, d)
    aff3 = aff_nn.reshape(2, n, d)

    target_tile_bytes, vmem_limit = _vmem_budget()
    tile_rows = _pick_tile_rows(n, d, anchor.dtype, target_tile_bytes)
    num_tiles = pl.cdiv(n, tile_rows)
    tail_rows = n % tile_rows  # 0 => exact fit, no tail-mask code emitted

    itemsize = jnp.dtype(anchor.dtype).itemsize
    cost = pl.CostEstimate(
        flops=6 * total_rows * d,          # 3 muls + 3 add-reduces per element pair
        transcendentals=total_rows,        # one rsqrt per crossed row
        bytes_accessed=2 * total_rows * d * itemsize + 2 * 4,
    )

    kernel = functools.partial(_affinity_loss_kernel, tail_rows=tail_rows)

    partials = pl.pallas_call(
        kernel,
        out_shape=jax.ShapeDtypeStruct((2, 1, 1), jnp.float32),
        grid_spec=pltpu.PrefetchScalarGridSpec(
            num_scalar_prefetch=0,
            grid=(2, num_tiles),
            in_specs=[
                # anchor: crop c, row tile i.
                pl.BlockSpec((None, tile_rows, d), lambda c, i: (c, i, 0)),
                # aff_nn: OPPOSITE crop (1 - c), row tile i -> crossing is just a different
                # DMA source offset, no in-kernel slicing.
                pl.BlockSpec((None, tile_rows, d), lambda c, i: (1 - c, i, 0)),
            ],
            # Per-crop partial sums: distinct output block per crop so the parallel crop
            # axis never races a shared output.
            out_specs=pl.BlockSpec((None, 1, 1), lambda c, i: (c, 0, 0)),
            scratch_shapes=[pltpu.VMEM((1, 1), jnp.float32)],
        ),
        compiler_params=pltpu.CompilerParams(
            # crop axis parallel (v7x dual-TC sharding; harmless on v5e/v6e),
            # row axis carries the per-crop accumulator.
            dimension_semantics=("parallel", "arbitrary"),
            vmem_limit_bytes=vmem_limit,
        ),
        cost_estimate=cost,
    )(anchor3, aff3)

    # 0.5 * (mean0 + mean1) == (sum0 + sum1) / (2N)
    return (jnp.sum(partials) * jnp.float32(1.0 / float(total_rows))).astype(jnp.float32)


def _reference(anchor, aff_nn):
    """Pure-JAX mirror of the PyTorch forward (cosine_similarity, eps=1e-8)."""
    n = anchor.shape[0] // 2
    anchors = (anchor[:n], anchor[n:])
    affs = (aff_nn[:n], aff_nn[n:])
    eps = jnp.float32(1e-8)
    total, terms = jnp.float32(0.0), 0
    for iq, q in enumerate(affs):
        for v in range(len(anchors)):
            if v == iq:
                continue
            x = anchors[v].astype(jnp.float32)
            qf = q.astype(jnp.float32)
            w12 = jnp.sum(x * qf, axis=1)
            n1 = jnp.maximum(jnp.sqrt(jnp.sum(x * x, axis=1)), eps)
            n2 = jnp.maximum(jnp.sqrt(jnp.sum(qf * qf, axis=1)), eps)
            cos = w12 / (n1 * n2)
            total = total + jnp.mean(1.0 - cos)
            terms += 1
    return (total / terms).astype(jnp.float32)


if __name__ == "__main__":
    key = jax.random.PRNGKey(0)
    k1, k2 = jax.random.split(key)
    # 2 crops x 8 samples each, hidden dim 32.
    anchor = jax.random.normal(k1, (16, 32), dtype=jnp.float32)
    aff_nn = jax.random.normal(k2, (16, 32), dtype=jnp.float32)

    loss = affinity_similarity_loss(anchor, aff_nn)
    jax.block_until_ready(loss)
    ref = _reference(anchor, aff_nn)
    assert jnp.allclose(loss, ref, rtol=1e-4, atol=1e-4), (loss, ref)

    # Ragged N (exercises the masked-tail path): 2 crops x 13 samples.
    k3, k4 = jax.random.split(k2)
    anchor_r = jax.random.normal(k3, (26, 32), dtype=jnp.float32)
    aff_r = jax.random.normal(k4, (26, 32), dtype=jnp.float32)
    loss_r = affinity_similarity_loss(anchor_r, aff_r)
    jax.block_until_ready(loss_r)
    ref_r = _reference(anchor_r, aff_r)
    assert jnp.allclose(loss_r, ref_r, rtol=1e-4, atol=1e-4), (loss_r, ref_r)

    # bf16 ingestion path (halves HBM traffic; kernel casts to f32 per tile).
    anchor_bf = anchor.astype(jnp.bfloat16)
    aff_bf = aff_nn.astype(jnp.bfloat16)
    loss_bf = affinity_similarity_loss(anchor_bf, aff_bf)
    jax.block_until_ready(loss_bf)
    ref_bf = _reference(anchor_bf, aff_bf)
    assert jnp.allclose(loss_bf, ref_bf, rtol=1e-3, atol=1e-3), (loss_bf, ref_bf)

    print("KERNEL_OK")
</pallas_src>

<mosaic_0001>
module attributes {stable_mosaic.version = 11 : i64} {
  func.func @_affinity_loss_kernel(%arg0: i32, %arg1: i32, %arg2: memref<1x8x32xf32, #tpu.memory_space<vmem>>, %arg3: memref<1x8x32xf32, #tpu.memory_space<vmem>>, %arg4: memref<1x1x1xf32, #tpu.memory_space<vmem>>, %arg5: memref<1x1xf32, #tpu.memory_space<vmem>>) attributes {dimension_semantics = [#tpu.dimension_semantics<parallel>, #tpu.dimension_semantics<arbitrary>], iteration_bounds = array<i64: 2, 1>, scalar_prefetch = 0 : i64, scratch_operands = 1 : i64, tpu.core_type = #tpu.core_type<tc>, window_params = [{transform_indices = @transform_0, window_bounds = array<i64: 1, 8, 32>}, {transform_indices = @transform_1, window_bounds = array<i64: 1, 8, 32>}, {transform_indices = @transform_2, window_bounds = array<i64: 1, 1, 1>}]} {
    %c0_i32 = arith.constant 0 : i32
    %0 = arith.cmpi eq, %arg1, %c0_i32 : i32
    %1 = arith.extui %0 : i1 to i32
    %c0_i32_0 = arith.constant 0 : i32
    %2 = arith.cmpi ne, %1, %c0_i32_0 : i32
    scf.if %2 {
      %cst_18 = arith.constant 0.000000e+00 : f32
      %36 = vector.broadcast %cst_18 : f32 to vector<1x1xf32>
      %c0_19 = arith.constant 0 : index
      %c0_20 = arith.constant 0 : index
      %37 = vector.load %arg5[%c0_19, %c0_20] : memref<1x1xf32, #tpu.memory_space<vmem>>, vector<1x1xf32>
      tpu.vector_store %arg5[%c0_19, %c0_20], %36 {strides = array<i32>} : memref<1x1xf32, #tpu.memory_space<vmem>>, vector<1x1xf32>,
    } else {
    }
    %c0 = arith.constant 0 : index
    %c0_1 = arith.constant 0 : index
    %c0_2 = arith.constant 0 : index
    %3 = vector.load %arg2[%c0, %c0_1, %c0_2] : memref<1x8x32xf32, #tpu.memory_space<vmem>>, vector<1x8x32xf32>
    %4 = vector.shape_cast %3 : vector<1x8x32xf32> to vector<8x32xf32>
    %c0_3 = arith.constant 0 : index
    %c0_4 = arith.constant 0 : index
    %c0_5 = arith.constant 0 : index
    %5 = vector.load %arg3[%c0_3, %c0_4, %c0_5] : memref<1x8x32xf32, #tpu.memory_space<vmem>>, vector<1x8x32xf32>
    %6 = vector.shape_cast %5 : vector<1x8x32xf32> to vector<8x32xf32>
    %7 = arith.mulf %4, %6 : vector<8x32xf32>
    %cst = arith.constant dense<0.000000e+00> : vector<8xf32>
    %8 = vector.multi_reduction <add>, %7, %cst [1] : vector<8x32xf32> to vector<8xf32>
    %9 = vector.shape_cast %8 : vector<8xf32> to vector<8x1xf32>
    %10 = arith.mulf %4, %4 : vector<8x32xf32>
    %cst_6 = arith.constant dense<0.000000e+00> : vector<8xf32>
    %11 = vector.multi_reduction <add>, %10, %cst_6 [1] : vector<8x32xf32> to vector<8xf32>
    %12 = vector.shape_cast %11 : vector<8xf32> to vector<8x1xf32>
    %13 = arith.mulf %6, %6 : vector<8x32xf32>
    %cst_7 = arith.constant dense<0.000000e+00> : vector<8xf32>
    %14 = vector.multi_reduction <add>, %13, %cst_7 [1] : vector<8x32xf32> to vector<8xf32>
    %15 = vector.shape_cast %14 : vector<8xf32> to vector<8x1xf32>
    %cst_8 = arith.constant 1.000000e-16 : f32
    %16 = vector.broadcast %cst_8 : f32 to vector<8x1xf32>
    %17 = arith.maximumf %12, %16 : vector<8x1xf32>
    %cst_9 = arith.constant 1.000000e-16 : f32
    %18 = vector.broadcast %cst_9 : f32 to vector<8x1xf32>
    %19 = arith.maximumf %15, %18 : vector<8x1xf32>
    %20 = arith.mulf %17, %19 : vector<8x1xf32>
    %21 = math.rsqrt %20 : vector<8x1xf32>
    %22 = arith.mulf %9, %21 : vector<8x1xf32>
    %cst_10 = arith.constant 1.000000e+00 : f32
    %23 = vector.broadcast %cst_10 : f32 to vector<8x1xf32>
    %24 = arith.subf %23, %22 : vector<8x1xf32>
    %c0_11 = arith.constant 0 : index
    %c0_12 = arith.constant 0 : index
    %25 = vector.load %arg5[%c0_11, %c0_12] : memref<1x1xf32, #tpu.memory_space<vmem>>, vector<1x1xf32>
    %26 = vector.shape_cast %24 : vector<8x1xf32> to vector<1x8x1xf32>
    %cst_13 = arith.constant dense<0.000000e+00> : vector<1xf32>
    %27 = vector.multi_reduction <add>, %26, %cst_13 [1, 2] : vector<1x8x1xf32> to vector<1xf32>
    %28 = vector.shape_cast %27 : vector<1xf32> to vector<1x1x1xf32>
    %29 = vector.extract %28[0, 0, 0] : f32 from vector<1x1x1xf32>
    %30 = vector.broadcast %29 : f32 to vector<1x1xf32>
    %31 = arith.addf %25, %30 : vector<1x1xf32>
    %c0_14 = arith.constant 0 : index
    %c0_15 = arith.constant 0 : index
    %32 = vector.load %arg5[%c0_14, %c0_15] : memref<1x1xf32, #tpu.memory_space<vmem>>, vector<1x1xf32>
    tpu.vector_store %arg5[%c0_14, %c0_15], %31 {strides = array<i32>} : memref<1x1xf32, #tpu.memory_space<vmem>>, vector<1x1xf32>,
    %c0_i32_16 = arith.constant 0 : i32
    %33 = arith.cmpi eq, %arg1, %c0_i32_16 : i32
    %34 = arith.extui %33 : i1 to i32
    %c0_i32_17 = arith.constant 0 : i32
    %35 = arith.cmpi ne, %34, %c0_i32_17 : i32
    scf.if %35 {
      %c0_18 = arith.constant 0 : index
      %c0_19 = arith.constant 0 : index
      %36 = vector.load %arg5[%c0_18, %c0_19] : memref<1x1xf32, #tpu.memory_space<vmem>>, vector<1x1xf32>
      %c0_20 = arith.constant 0 : index
      %c0_21 = arith.constant 0 : index
      %c0_22 = arith.constant 0 : index
      %37 = vector.load %arg4[%c0_20, %c0_21, %c0_22] : memref<1x1x1xf32, #tpu.memory_space<vmem>>, vector<1x1x1xf32>
      %38 = vector.shape_cast %37 : vector<1x1x1xf32> to vector<1x1xf32>
      %39 = vector.shape_cast %36 : vector<1x1xf32> to vector<1x1x1xf32>
      tpu.vector_store %arg4[%c0_20, %c0_21, %c0_22], %39 {strides = array<i32>} : memref<1x1x1xf32, #tpu.memory_space<vmem>>, vector<1x1x1xf32>,
    } else {
    }
    return
  }
  func.func @transform_0(%arg0: i32, %arg1: i32) -> (i32, i32, i32) {
    %c0_i32 = arith.constant 0 : i32
    %c0_i32_0 = arith.constant 0 : i32
    return %arg0, %arg1, %c0_i32 : i32, i32, i32
  }
  func.func @transform_1(%arg0: i32, %arg1: i32) -> (i32, i32, i32) {
    %c1_i32 = arith.constant 1 : i32
    %0 = arith.subi %c1_i32, %arg0 : i32
    %c0_i32 = arith.constant 0 : i32
    %c0_i32_0 = arith.constant 0 : i32
    return %0, %arg1, %c0_i32 : i32, i32, i32
  }
  func.func @transform_2(%arg0: i32, %arg1: i32) -> (i32, i32, i32) {
    %c0_i32 = arith.constant 0 : i32
    %c0_i32_0 = arith.constant 0 : i32
    %c0_i32_1 = arith.constant 0 : i32
    return %arg0, %c0_i32, %c0_i32_0 : i32, i32, i32
  }
}

</mosaic_0001>

<bundles_post_ra>
// kernel: tpu_custom_call.1
= control target key start
LH: loop header
LB: loop body
LE: loop exit
PB: predicated region body
PF: predicated region fallthrough
CT: control target
= control target key end

     0   :  { %7 = vsyncpa [#allocation4], 0  ;;  %s848_s0 = inlined_call_operand.hbm [shape: f32[2,8,32], index: 0, kind: input, shape index: {}]   ;;  %s849_s1 = inlined_call_operand.hbm [shape: f32[2,8,32], index: 1, kind: input, shape index: {}]   ;;  %s850_s2 = inlined_call_operand.vmem [shape: f32[2,1,1], index: 2, kind: output, shape index: {}]  }
   0x1   :  { %9 = vsyncpa [#allocation4 + $0x1], 0 }
   0x2   :  { %10 = vsyncpa [#allocation6], 0 }
   0x3   :  { %12 = vsyncpa [#allocation6 + $0x1], 0  ;;  %s616_s9 = smov 0   ;;  %s618_s10 = smov 0  }
   0x4   :  { %s620_s11 = smov 0   ;;  %s622_s12 = smov 0  }
   0x5   :  { %s624_s13 = smov 0   ;;  %s626_s14 = smov 0  }
   0x6   :  { %s628_s15 = smov 0   ;;  %s630_s16 = smov 0  }
   0x7   :  { %s632_s17 = smov 0  }
   0x8 LB: > { %s356_s18 = sadd.s32 4294967295, %s596_s17   ;;  %s39_s19 = sadd.s32 1, %s584_s14  ;;  %s596_s17 = sphi %s632_s17, %s18_s17   ;;  %s592_s16 = sphi %s630_s16, %s875_s16   ;;  %s588_s15 = sphi %s628_s15, %s874_s15   ;;  %s584_s14 = sphi %s626_s14, %s873_s14   ;;  %s580_s13 = sphi %s624_s13, %s872_s13   ;;  %s576_s12 = sphi %s622_s12, %s871_s12   ;;  %s572_s11 = sphi %s620_s11, %s870_s11   ;;  %s568_s10 = sphi %s618_s10, %s869_s10   ;;  %s564_s9 = sphi %s616_s9, %s868_s9  }
   0x9   : > { %p46_p0 = scmp.ne.s32.totalorder %s584_s14, %s580_s13  ;;  %p852_p1 = scmp.eq.s32.totalorder %s596_s17, 0 }
   0xa   : > { %p52_p2 = scmp.ne.s32.totalorder %s580_s13, %s576_s12  ;;  %p665_p3 = scmp.eq.s32.totalorder %s356_s18, 0 }
   0xb   : > { %p48_p4 = por %p852_p1, %p46_p0  ;;  %p851_p6 = scmp.lt.s32.totalorder %s596_s17, 2 }
   0xc   : > { %p673_p5 = por %p665_p3, %p52_p2  ;;  %s132_s22 = sand.u32 1, %s584_s14  }
   0xd   : > { %s361_s23 = sshll.u32 %s592_s16, 7  ;;  %s360_s24 = sshll.u32 %s132_s22, 3 }
   0xe   : > { %s856_s21 = scalar_select %p673_p5, 1, 0 }
   0xf   : > { %s683_s27 = scalar_lea.hbm %s848_s0, %s361_s23  ;;  %s136_s28 = scalar_lea.vmem [#allocation3], %s360_s24 }
  0x10   : > { %s144_s29 = sshll.u32 %s136_s28, 4  ;;  %p687_p7 = pnand %p851_p6, %p48_p4  ;;  %s691_s29 = int_to_ptr.vmem [resolvable:$true] %s144_s29 }
  0x11   : > { %s133_s3 = scalar_lea.sflag [#allocation4], %s132_s22  ;;  %s458_s4 = scalar_lea.hbm %s683_s27, 128 }
  0x12   : > { %p459_p10 = scmp.ne.s32.totalorder %s683_s27, %s458_s4  ;;  %p460_p11 = pneg %p687_p7 }
  0x13   : > { %s463_s7 = scalar_lea.hbm %s848_s0, 256  ;;  %p464_p0 = scmp.lt.u32.totalorder %s683_s27, %s848_s0 }
  0x14   : > { %p461_p12 = pnand %p460_p11, %p459_p10  ;;  %p465_p2 = scmp.lt.u32.totalorder %s463_s7, %s458_s4 }
  0x15   : > { %p467_p6 = scmp.lt.u32.totalorder %s458_s4, %s683_s27 }
  0x16   : > { %p462_p13 = pneg %p461_p12  ;;  %p466_p4 = por %p465_p2, %p464_p0 }
  0x18   : > { %p468_p1 = por %p467_p6, %p466_p4 }
  0x1a   : > { %p469_p8 = pnand %p468_p1, %p462_p13 }
  0x1c   : > { %472 = shalt.err (!%p469_p8)
}
  0x1d   : > { %s473_s18 = scalar_lea.vmem %s691_s29, 128  ;;  %s598_s22 = smov [#allocation3]  }
  0x1e   : > { %p474_p10 = scmp.ne.s32.totalorder %s691_s29, %s473_s18  ;;  %s478_s23 = sshll.u32 %s598_s22, 4  ;;  %s479_s23 = int_to_ptr.vmem [resolvable:$false] %s478_s23 }
  0x1f   : > { %s480_s24 = scalar_lea.vmem %s479_s23, 256  ;;  %p481_p5 = scmp.lt.s32.totalorder %s691_s29, %s479_s23 }
  0x20   : > { %p476_p12 = pnand %p474_p10, %p460_p11  ;;  %p482_p0 = scmp.lt.s32.totalorder %s480_s24, %s473_s18 }
  0x22   : > { %p477_p9 = pneg %p476_p12  ;;  %p483_p2 = por %p482_p0, %p481_p5 }
  0x24   : > { %p484_p6 = pnand %p483_p2, %p477_p9 }
  0x26   : > { %487 = shalt.err (!%p484_p6)
}
  0x27   : > { %378 = dma.hbm_to_vmem [thread:$0]  (!%p687_p7), %s683_s27, 128, %s691_s29, %s133_s3  }
  0x28   : > { %p858_p1 = scmp.lt.s32.totalorder %s596_s17, 3  ;;  %p859_p5 = scmp.ge.s32.totalorder %s596_s17, 1 }
  0x29   : > { %s30_s26 = sadd.s32 1, %s592_s16  ;;  %s62_s28 = ssub.s32 1, %s592_s16 }
  0x2a   : > { %p724_p8 = pnand %p859_p5, %p858_p1  ;;  %p32_p9 = scmp.ge.s32.totalorder %s30_s26, 2 }
  0x2b   : > { %s69_s30 = sadd.s32 1, %s572_s11  ;;  %p76_p11 = scmp.ne.s32.totalorder %s572_s11, %s568_s10 }
  0x2c   : > { %s877_s26 = smov (%p32_p9, %s30_s26), 0  ;;  %p861_p13 = scmp.eq.s32.totalorder %s596_s17, 0 }
  0x2d   : > { %p82_p4 = scmp.ne.s32.totalorder %s568_s10, %s564_s9  ;;  %s34_s29 = ssub.s32 %s592_s16, %s877_s26 }
  0x2e   : > { %p737_p7 = por %p76_p11, %p861_p13  ;;  %s63_s3 = ssub.s32 1, %s877_s26 }
  0x2f   : > { %p37_p10 = scmp.eq.s32.totalorder %s34_s29, 0  ;;  %s64_s4 = ssub.s32 %s62_s28, %s63_s3 }
  0x30   : > { %p67_p12 = scmp.eq.s32.totalorder %s64_s4, 0  ;;  %p748_p0 = por %p82_p4, %p665_p3 }
  0x31   : > { %s755_s6 = scalar_select %p37_p10, %s584_s14, %s39_s19  }
  0x32   : > { %s863_s5 = scalar_select %p748_p0, 1, 0 }
  0x33   : > { %s758_s7 = scalar_select %p67_p12, %s572_s11, %s69_s30  }
  0x34   : > { %s151_s8 = sand.u32 1, %s572_s11   ;;  %s363_s12 = sshll.u32 %s62_s28, 7 }
  0x35   : > { %s362_s18 = sshll.u32 %s151_s8, 3  ;;  %s764_s23 = scalar_lea.hbm %s849_s1, %s363_s12 }
  0x36   : > { %s155_s20 = scalar_lea.vmem [#allocation5], %s362_s18  ;;  %p864_p3 = scmp.lt.s32.totalorder %s596_s17, 2 }
  0x37   : > { %s164_s24 = sshll.u32 %s155_s20, 4  ;;  %s152_s28 = scalar_lea.sflag [#allocation6], %s151_s8  ;;  %s774_s24 = int_to_ptr.vmem [resolvable:$true] %s164_s24 }
  0x38   : > { %p770_p2 = pnand %p864_p3, %p737_p7  ;;  %s488_s30 = scalar_lea.hbm %s764_s23, 128 }
  0x39   : > { %p489_p6 = scmp.ne.s32.totalorder %s764_s23, %s488_s30  ;;  %s493_s3 = scalar_lea.hbm %s849_s1, 256 }
  0x3a   : > { %p490_p1 = pneg %p770_p2  ;;  %p494_p11 = scmp.lt.u32.totalorder %s764_s23, %s849_s1 }
  0x3b   : > { %p495_p13 = scmp.lt.u32.totalorder %s493_s3, %s488_s30  ;;  %p497_p4 = scmp.lt.u32.totalorder %s488_s30, %s764_s23 }
  0x3c   : > { %p491_p5 = pnand %p490_p1, %p489_p6 }
  0x3d   : > { %p496_p7 = por %p495_p13, %p494_p11 }
  0x3e   : > { %p492_p9 = pneg %p491_p5 }
  0x3f   : > { %p498_p10 = por %p497_p4, %p496_p7 }
  0x41   : > { %p499_p12 = pnand %p498_p10, %p492_p9 }
  0x43   : > { %502 = shalt.err (!%p499_p12)
}
  0x44   : > { %s503_s8 = scalar_lea.vmem %s774_s24, 128  ;;  %s599_s18 = smov [#allocation5]  }
  0x45   : > { %p504_p3 = scmp.ne.s32.totalorder %s774_s24, %s503_s8  ;;  %s508_s22 = sshll.u32 %s599_s18, 4  ;;  %s509_s22 = int_to_ptr.vmem [resolvable:$false] %s508_s22 }
  0x46   : > { %s510_s9 = scalar_lea.vmem %s509_s22, 256  ;;  %p511_p0 = scmp.lt.s32.totalorder %s774_s24, %s509_s22 }
  0x47   : > { %p506_p6 = pnand %p504_p3, %p490_p1  ;;  %p512_p11 = scmp.lt.s32.totalorder %s510_s9, %s503_s8 }
  0x49   : > { %p507_p5 = pneg %p506_p6  ;;  %p513_p13 = por %p512_p11, %p511_p0 }
  0x4b   : > { %p514_p7 = pnand %p513_p13, %p507_p5 }
  0x4d   : > { %517 = shalt.err (!%p514_p7)
}
  0x4e   : > { %381 = dma.hbm_to_vmem [thread:$0]  (!%p770_p2), %s764_s23, 128, %s774_s24, %s152_s28  }
  0x4f   : > { %173 = sbr.rel (%p724_p8) target bundleno = 477 (0x1dd), region = 28  ;;  %s175_s20 = sand.u32 (!%p724_p8), 1, %s580_s13  }
  0x50   : > { %s365_s30 = sshll.u32 (!%p724_p8), %s175_s20, 3  ;;  %s176_s29 = scalar_lea.sflag (!%p724_p8), [#allocation4], %s175_s20 }
  0x51   : > { %s179_s27 = scalar_lea.vmem (!%p724_p8), [#allocation3], %s365_s30  ;;  %p866_p1 = scmp.ne.s32.totalorder (!%p724_p8), %s856_s21, 0 }
  0x56   : > { %555 = dma.done.wait (%p866_p1), %s176_s29, 128  }
  0x57   : > { %557 = vsyncadd (%p866_p1), %s176_s29, 4294967168  ;;  %s184_s19 = sand.u32 1, %s568_s10   ;;  %p867_p0 = scmp.ne.s32.totalorder %s863_s5, 0 }
  0x58   : > { %s366_s3 = sshll.u32 %s184_s19, 3  ;;  %s185_s4 = scalar_lea.sflag [#allocation6], %s184_s19 }
  0x59   : > { %s188_s23 = scalar_lea.vmem [#allocation5], %s366_s3 }
  0x5a   : > { %559 = dma.done.wait (%p867_p0), %s185_s4, 128  }
  0x5b   : > { %561 = vsyncadd (%p867_p0), %s185_s4, 4294967168  ;;  %vm220_vm0 = vcmask 0   ;;  %v600_v0 = vmov 0.0   ;;  %v222_v1 = vld [vmem:[%s179_s27] sm:$0xff]  ;;  %vm225_vm1 = vcmask 261120   ;;  %v223_v2 = vld [vmem:[%s188_s23] sm:$0xff] }
  0x5c   : > { %221 = vst.msk [vmem:[#allocation2] sm:$0x1] %vm220_vm0, %v600_v0  ;;  %v229_v3 = vmul.f32 %v222_v1, %v222_v1  ;;  %v233_v4 = vmul.f32 %v223_v2, %v223_v2  ;;  %v224_v5 = vmul.f32 %v223_v2, %v222_v1  ;;  %vm244_vm2 = vcmask 7168   ;;  %p213_p8 = scmp.lt.s32.totalorder %s588_s15, 1 }
  0x5e   : > { %v230_v6 = vsel %vm225_vm1, %v229_v3, 0.0  ;;  %v226_v7 = vsel %vm225_vm1, %v224_v5, 0.0  ;;  %v234_v8 = vsel %vm225_vm1, %v233_v4, 0.0  ;;  %s879_s15 = smov (!%p213_p8, %s588_s15), 1 }
  0x5f   : > { %231 = vadd.xlane.f32.xlu0 %v230_v6  ;;  %227 = vadd.xlane.f32.xlu1 %v226_v7  ;;  %s215_s24 = scalar_lea.vmem %s850_s2, %s879_s15 }
  0x63   : > { %235 = vadd.xlane.f32.xlu0 %v234_v8  ;;  %v243_v26 = vld [vmem:[#allocation2] sm:$0x1] }
  0xec   : > { %v232_v9 = vpop.xlane.xlu0 %231  ;;  %v228_v14 = vpop.xlane.xlu1 %227 }
  0xed   : > { %v237_v11 = vmax.f32 %v232_v9, 1e-16 }
  0xf0   : > { %v236_v10 = vpop.xlane.xlu0 %235 }
  0xf1   : > { %v238_v12 = vmax.f32 %v236_v10, 1e-16 }
  0xf3   : > { %v239_v13 = vmul.f32 %v238_v12, %v237_v11 }
  0xf5   : > { %456 = vrsqrt.f32 %v239_v13 }
  0xff   : > { %v457_v15 = vpop.eup %456 }
 0x100   : > { %v241_v16 = vmul.f32 %v457_v15, %v228_v14 }
 0x102   : > { %v242_v17 = vsub.f32 1.0, %v241_v16 }
 0x104   : > { %v245_v18 = vsel %vm244_vm2, %v242_v17, 0.0 }
 0x105   : > { %246 = vadd.xlane.f32.xlu1 %v245_v18 }
 0x192   : > { %v247_v19 = vpop.xlane.xlu1 %246 }
 0x193   : > { %v248_v20 = vrot.slane %v247_v19, 4 }
 0x195   : > { %v249_v21 = vadd.f32 %v248_v20, %v247_v19 }
 0x197   : > { %v250_v22 = vrot.slane %v249_v21, 2 }
 0x199   : > { %v251_v23 = vadd.f32 %v250_v22, %v249_v21 }
 0x19b   : > { %v252_v24 = vrot.slane %v251_v23, 1 }
 0x19d   : > { %v253_v25 = vadd.f32 %v252_v24, %v251_v23 }
 0x19f   : > { %369 = vpush %v253_v25 }
 0x1d0   : > { %s370_s21 = spop %369 }
 0x1d1   : > { %v255_v27 = vstv %s370_s21 }
 0x1d2   : > { %v256_v28 = vadd.f32 %v255_v27, %v243_v26 }
 0x1d4   : > { %258 = vst.msk [vmem:[#allocation2] sm:$0x1] %vm220_vm0, %v256_v28 }
 0x1db   : > { %v262_v29 = vld [vmem:[#allocation2] sm:$0x1] }
 0x1dc   : > { %263 = vst.msk [vmem:[%s215_s24] sm:$0x1] %vm220_vm0, %v262_v29 }
 0x1dd PF: > { %s18_s17 = sadd.s32 1, %s596_s17   ;;  %s868_s9 = smov %s568_s10 }
 0x1de   : > { %p15_p2 = scmp.ge.s32.totalorder %s18_s17, 4   ;;  %s869_s10 = smov %s572_s11 }
 0x1df   : > { %s870_s11 = smov %s758_s7  ;;  %s871_s12 = smov %s580_s13 }
 0x1e0   : > { %s872_s13 = smov %s584_s14  ;;  %s873_s14 = smov %s755_s6 }
 0x1e1   : > { %s874_s15 = smov %s592_s16  ;;  %s875_s16 = smov %s877_s26 }
 0x1e2   :  { %17 = sbr.rel (!%p15_p2) target bundleno = 8 (0x8), region = 89 }
 0x1e9   :  { %281 = vsyncpa [#allocation4], 1 }
 0x1ea   :  { %283 = vsyncpa [#allocation4 + $0x1], 1 }
 0x1eb   :  { %284 = vsyncpa [#allocation6], 1 }
 0x1ec   :  { %286 = vsyncpa [#allocation6 + $0x1], 1 }

</bundles_post_ra>
